<compile_context>
chip_gen: v7x
topology: tpu7x:2x2x1
jax: 0.10.0
libtpu: 0.0.40
codegen_flags: <defaults>
</compile_context>

<pallas_src>
import jax
import jax.numpy as jnp
from jax.experimental import pallas as pl
from jax.experimental.pallas import tpu as pltpu

# ---- configuration (SplAtConv2d(in=8, out=8, k=3, s=1, p=1, groups=2, radix=2,
#                     reduction_factor=4, bias=True, norm_layer=BatchNorm2d)) ----
B = 2
C_IN = 8
C_OUT = 8
RADIX = 2
CARD = 2                              # cardinality (groups)
KH = KW = 3
STRIDE = 1
PAD = 1
DIL = 1
H = W = 16
INTER = max(C_IN * RADIX // 4, 32)    # reduction_factor = 4  ->  32
C_OUT2 = C_OUT * RADIX
H_OUT = (H + 2 * PAD - DIL * (KH - 1) - 1) // STRIDE + 1
W_OUT = (W + 2 * PAD - DIL * (KW - 1) - 1) // STRIDE + 1
HW = H_OUT * W_OUT
NROW = B * HW                         # 512  (lane axis inside the kernel)
KDIM = KH * KW * C_IN                 # 72   (fused contraction dim, multiple of 8)
EPS = 1e-5


# --------------------------- Pallas kernel ---------------------------
def splat_kernel(xs_ref, wc_ref, w1_ref, w2_ref, off_ref, out_ref):
    # ---- grouped 3x3 conv (+ folded bias + BN0) + ReLU : ONE fused MXU matmul ----
    y = jnp.dot(wc_ref[...], xs_ref[...], preferred_element_type=jnp.float32)
    y = jnp.maximum(y + off_ref[0:C_OUT2, :], 0.0)                  # (C_OUT2, NROW)

    # ---- split-sum + adaptive_avg_pool2d(., 1) : one MXU reduce-matmul (no XLU loop) ----
    ridx = jax.lax.broadcasted_iota(jnp.int32, (NROW, B), 0)
    cidx = jax.lax.broadcasted_iota(jnp.int32, (NROW, B), 1)
    pool = jnp.where((ridx >= cidx * HW) & (ridx < (cidx + 1) * HW),
                     jnp.float32(1.0 / HW), jnp.float32(0.0))       # (NROW, B) block-ones
    pooled = jnp.dot(y, pool, preferred_element_type=jnp.float32)   # (C_OUT2, B)
    gap = pooled[:C_OUT, :] + pooled[C_OUT:, :]                     # radix sum, (C_OUT, B)

    # ---- fc1 (+ folded BN1) + ReLU, then fc2 : batched over the B columns ----
    h = jnp.maximum(
        jnp.dot(w1_ref[...], gap, preferred_element_type=jnp.float32)
        + off_ref[C_OUT2:C_OUT2 + INTER, :], 0.0)                   # (INTER, B)
    logit = (jnp.dot(w2_ref[...], h, preferred_element_type=jnp.float32)
             + off_ref[C_OUT2 + INTER:C_OUT2 + INTER + C_OUT2, :])  # (C_OUT2, B)

    # ---- radix softmax: EUP exp + EUP approx reciprocal (+ 1 Newton refinement) ----
    l0, l1 = logit[:C_OUT, :], logit[C_OUT:, :]
    m = jnp.maximum(l0, l1)
    e0 = jnp.exp(l0 - m)
    e1 = jnp.exp(l1 - m)
    den = e0 + e1
    r = pl.reciprocal(den, approx=True)
    r = r * (2.0 - den * r)                                         # Newton step (free, tiny)
    a0 = e0 * r
    a1 = e1 * r                                                     # (C_OUT, B)

    # ---- attention-weighted recombination of the radix splits (lane-dense store) ----
    att0 = jnp.concatenate(
        [jnp.broadcast_to(a0[:, b:b + 1], (C_OUT, HW)) for b in range(B)], axis=1)
    att1 = jnp.concatenate(
        [jnp.broadcast_to(a1[:, b:b + 1], (C_OUT, HW)) for b in range(B)], axis=1)
    out_ref[...] = y[:C_OUT, :] * att0 + y[C_OUT:, :] * att1        # (C_OUT, NROW)


# --------------------------- glue (plain JAX, layout plumbing only) ---------------------------
def grouped_conv_to_dense(w, groups):
    """(Cout, Cin_pg, KH, KW) torch-layout grouped weight -> dense (KH*KW, Cin, Cout)."""
    cout, cin_pg, kh, kw = w.shape
    cout_pg = cout // groups
    cin = cin_pg * groups
    dense = jnp.zeros((kh, kw, cin, cout), w.dtype)
    for g in range(groups):
        blk = jnp.transpose(w[g * cout_pg:(g + 1) * cout_pg], (2, 3, 1, 0))
        dense = dense.at[:, :, g * cin_pg:(g + 1) * cin_pg,
                         g * cout_pg:(g + 1) * cout_pg].set(blk)
    return dense.reshape(kh * kw, cin, cout)


def grouped_1x1_to_dense(w, groups):
    return grouped_conv_to_dense(w, groups)[0]          # (Cin, Cout)


def fold_bn(gamma, beta, mean, var):
    scale = gamma / jnp.sqrt(var + EPS)
    offset = beta - mean * scale
    return scale, offset


def im2col_T(x_nchw):
    """NCHW -> single dense (KH*KW*C_IN, B*H_OUT*W_OUT) im2col slab (pixels on lanes)."""
    xh = jnp.transpose(x_nchw, (0, 2, 3, 1))
    xp = jnp.pad(xh, ((0, 0), (PAD, PAD), (PAD, PAD), (0, 0)))
    cols = []
    for kh in range(KH):
        for kw in range(KW):
            h0, w0 = kh * DIL, kw * DIL
            sl = xp[:, h0:h0 + (H_OUT - 1) * STRIDE + 1:STRIDE,
                       w0:w0 + (W_OUT - 1) * STRIDE + 1:STRIDE, :]
            cols.append(sl.reshape(NROW, C_IN))
    xs = jnp.stack(cols, axis=0)                         # (9, NROW, C_IN)
    return jnp.transpose(xs, (0, 2, 1)).reshape(KDIM, NROW)


def build_params(raw):
    """Fold biases + eval-mode BatchNorms into the weights / a single offset column."""
    s0, o0 = fold_bn(raw["g0"], raw["beta0"], raw["m0"], raw["v0"])
    s1, o1 = fold_bn(raw["g1"], raw["beta1"], raw["m1"], raw["v1"])
    wc = grouped_conv_to_dense(raw["w_conv"], CARD * RADIX)          # (9, C_IN, C_OUT2)
    wc_T = wc.reshape(KDIM, C_OUT2).T * s0[:, None]                  # (C_OUT2, 72), BN0 folded
    w1_T = grouped_1x1_to_dense(raw["w_fc1"], CARD).T * s1[:, None]  # (INTER, C_OUT), BN1 folded
    w2_T = grouped_1x1_to_dense(raw["w_fc2"], CARD).T                # (C_OUT2, INTER)
    off0 = raw["b_conv"] * s0 + o0                                   # (C_OUT2,)
    off1 = raw["b_fc1"] * s1 + o1                                    # (INTER,)
    off = jnp.concatenate([off0, off1, raw["b_fc2"]])[:, None]       # (64, 1) packed offsets
    return {"wc": wc_T.astype(jnp.float32), "w1": w1_T.astype(jnp.float32),
            "w2": w2_T.astype(jnp.float32), "off": off.astype(jnp.float32)}


@jax.jit
def splat_conv2d(x_nchw, p):
    xs_T = im2col_T(x_nchw)                              # (72, 512) dense slab
    vmem = pl.BlockSpec(memory_space=pltpu.MemorySpace.VMEM)
    out_T = pl.pallas_call(
        splat_kernel,
        out_shape=jax.ShapeDtypeStruct((C_OUT, NROW), jnp.float32),  # lane-dense output
        in_specs=[vmem] * 5,
        out_specs=vmem,
    )(xs_T, p["wc"], p["w1"], p["w2"], p["off"])
    # wrapper-side layout plumbing back to NCHW
    return jnp.transpose(out_T.reshape(C_OUT, B, H_OUT, W_OUT), (1, 0, 2, 3))


def reference(x, raw):
    """Pure-JAX reference mirroring the PyTorch forward (eval-mode BN, radix-major rSoftMax)."""
    y = jax.lax.conv_general_dilated(
        x, raw["w_conv"], window_strides=(STRIDE, STRIDE),
        padding=((PAD, PAD), (PAD, PAD)), rhs_dilation=(DIL, DIL),
        dimension_numbers=("NCHW", "OIHW", "NCHW"),
        feature_group_count=CARD * RADIX)
    y = y + raw["b_conv"][None, :, None, None]
    s0, o0 = fold_bn(raw["g0"], raw["beta0"], raw["m0"], raw["v0"])
    y = y * s0[None, :, None, None] + o0[None, :, None, None]
    y = jnp.maximum(y, 0.0)
    gap = jnp.mean(y[:, :C_OUT] + y[:, C_OUT:], axis=(2, 3))
    h = gap @ grouped_1x1_to_dense(raw["w_fc1"], CARD) + raw["b_fc1"]
    s1, o1 = fold_bn(raw["g1"], raw["beta1"], raw["m1"], raw["v1"])
    h = jnp.maximum(h * s1 + o1, 0.0)
    logit = h @ grouped_1x1_to_dense(raw["w_fc2"], CARD) + raw["b_fc2"]
    a = jax.nn.softmax(logit.reshape(B, RADIX, C_OUT), axis=1).reshape(B, C_OUT2)
    return (a[:, :C_OUT, None, None] * y[:, :C_OUT]
            + a[:, C_OUT:, None, None] * y[:, C_OUT:])


if __name__ == "__main__":
    keys = jax.random.split(jax.random.PRNGKey(0), 16)
    raw = {
        # conv: nn.Conv2d(8, 16, 3, groups=4, bias=True)  -> weight (16, 2, 3, 3)
        "w_conv": jax.random.normal(keys[0], (C_OUT2, C_IN // (CARD * RADIX), KH, KW)) * 0.1,
        "b_conv": jax.random.normal(keys[1], (C_OUT2,)) * 0.1,
        # bn0 (eval mode)
        "g0": 1.0 + 0.1 * jax.random.normal(keys[2], (C_OUT2,)),
        "beta0": 0.1 * jax.random.normal(keys[3], (C_OUT2,)),
        "m0": 0.1 * jax.random.normal(keys[4], (C_OUT2,)),
        "v0": jax.random.uniform(keys[5], (C_OUT2,), minval=0.5, maxval=1.5),
        # fc1: nn.Conv2d(8, 32, 1, groups=2) -> weight (32, 4, 1, 1)
        "w_fc1": jax.random.normal(keys[6], (INTER, C_OUT // CARD, 1, 1)) * 0.1,
        "b_fc1": jax.random.normal(keys[7], (INTER,)) * 0.1,
        # bn1 (eval mode)
        "g1": 1.0 + 0.1 * jax.random.normal(keys[8], (INTER,)),
        "beta1": 0.1 * jax.random.normal(keys[9], (INTER,)),
        "m1": 0.1 * jax.random.normal(keys[10], (INTER,)),
        "v1": jax.random.uniform(keys[11], (INTER,), minval=0.5, maxval=1.5),
        # fc2: nn.Conv2d(32, 16, 1, groups=2) -> weight (16, 16, 1, 1)
        "w_fc2": jax.random.normal(keys[12], (C_OUT2, INTER // CARD, 1, 1)) * 0.1,
        "b_fc2": jax.random.normal(keys[13], (C_OUT2,)) * 0.1,
    }
    params = build_params(raw)

    x = jax.random.normal(keys[15], (B, C_IN, H, W), jnp.float32)

    out = splat_conv2d(x, params)
    out = jax.block_until_ready(out)

    ref = jax.block_until_ready(reference(x, raw))
    assert out.shape == (B, C_OUT, H_OUT, W_OUT)
    assert jnp.max(jnp.abs(out - ref)) < 1e-3, "Pallas kernel mismatch vs JAX reference"
    print("KERNEL_OK")
</pallas_src>

<mosaic_0001>
module attributes {stable_mosaic.version = 11 : i64} {
  func.func @splat_kernel(%arg0: memref<72x512xf32, #tpu.memory_space<vmem>>, %arg1: memref<16x72xf32, #tpu.memory_space<vmem>>, %arg2: memref<32x8xf32, #tpu.memory_space<vmem>>, %arg3: memref<16x32xf32, #tpu.memory_space<vmem>>, %arg4: memref<64x1xf32, #tpu.memory_space<vmem>>, %arg5: memref<8x512xf32, #tpu.memory_space<vmem>>) attributes {dimension_semantics = [], scalar_prefetch = 0 : i64, scratch_operands = 0 : i64, tpu.core_type = #tpu.core_type<tc>} {
    %c0 = arith.constant 0 : index
    %c0_0 = arith.constant 0 : index
    %0 = vector.load %arg1[%c0, %c0_0] : memref<16x72xf32, #tpu.memory_space<vmem>>, vector<16x72xf32>
    %c0_1 = arith.constant 0 : index
    %c0_2 = arith.constant 0 : index
    %1 = vector.load %arg0[%c0_1, %c0_2] : memref<72x512xf32, #tpu.memory_space<vmem>>, vector<72x512xf32>
    %cst = arith.constant dense<0.000000e+00> : vector<16x512xf32>
    %2 = tpu.matmul %0, %1, %cst {dimension_numbers = #tpu.dot_dimension_numbers<[1], [0], [0], [1], [0, 0, 1, 1], [], []>} : vector<16x72xf32>, vector<72x512xf32>, vector<16x512xf32> -> vector<16x512xf32>
    %c0_3 = arith.constant 0 : index
    %c0_4 = arith.constant 0 : index
    %3 = vector.load %arg4[%c0_3, %c0_4] : memref<64x1xf32, #tpu.memory_space<vmem>>, vector<16x1xf32>
    %4 = vector.broadcast %3 : vector<16x1xf32> to vector<16x512xf32>
    %5 = arith.addf %2, %4 : vector<16x512xf32>
    %cst_5 = arith.constant 0.000000e+00 : f32
    %6 = vector.broadcast %cst_5 : f32 to vector<16x512xf32>
    %7 = arith.maximumf %5, %6 : vector<16x512xf32>
    %8 = tpu.iota {dimensions = array<i32: 0>} : vector<512x2xi32>
    %9 = tpu.iota {dimensions = array<i32: 1>} : vector<512x2xi32>
    %c256_i32 = arith.constant 256 : i32
    %10 = vector.broadcast %c256_i32 : i32 to vector<512x2xi32>
    %11 = arith.muli %9, %10 : vector<512x2xi32>
    %12 = arith.cmpi sge, %8, %11 : vector<512x2xi32>
    %c1_i32 = arith.constant 1 : i32
    %13 = vector.broadcast %c1_i32 : i32 to vector<512x2xi32>
    %14 = arith.addi %9, %13 : vector<512x2xi32>
    %c256_i32_6 = arith.constant 256 : i32
    %15 = vector.broadcast %c256_i32_6 : i32 to vector<512x2xi32>
    %16 = arith.muli %14, %15 : vector<512x2xi32>
    %17 = arith.cmpi slt, %8, %16 : vector<512x2xi32>
    %18 = arith.andi %12, %17 : vector<512x2xi1>
    %cst_7 = arith.constant 3.906250e-03 : f32
    %cst_8 = arith.constant 0.000000e+00 : f32
    %19 = vector.broadcast %cst_7 : f32 to vector<512x2xf32>
    %20 = vector.broadcast %cst_8 : f32 to vector<512x2xf32>
    %21 = arith.select %18, %19, %20 : vector<512x2xi1>, vector<512x2xf32>
    %cst_9 = arith.constant dense<0.000000e+00> : vector<16x2xf32>
    %22 = tpu.matmul %7, %21, %cst_9 {dimension_numbers = #tpu.dot_dimension_numbers<[1], [0], [0], [1], [0, 0, 1, 1], [], []>} : vector<16x512xf32>, vector<512x2xf32>, vector<16x2xf32> -> vector<16x2xf32>
    %23 = vector.extract_strided_slice %22 {offsets = [0, 0], sizes = [8, 2], strides = [1, 1]} : vector<16x2xf32> to vector<8x2xf32>
    %24 = vector.extract_strided_slice %22 {offsets = [8, 0], sizes = [8, 2], strides = [1, 1]} : vector<16x2xf32> to vector<8x2xf32>
    %25 = arith.addf %23, %24 : vector<8x2xf32>
    %c0_10 = arith.constant 0 : index
    %c0_11 = arith.constant 0 : index
    %26 = vector.load %arg2[%c0_10, %c0_11] : memref<32x8xf32, #tpu.memory_space<vmem>>, vector<32x8xf32>
    %cst_12 = arith.constant dense<0.000000e+00> : vector<32x2xf32>
    %27 = tpu.matmul %26, %25, %cst_12 {dimension_numbers = #tpu.dot_dimension_numbers<[1], [0], [0], [1], [0, 0, 1, 1], [], []>} : vector<32x8xf32>, vector<8x2xf32>, vector<32x2xf32> -> vector<32x2xf32>
    %c16 = arith.constant 16 : index
    %c0_13 = arith.constant 0 : index
    %28 = vector.load %arg4[%c16, %c0_13] : memref<64x1xf32, #tpu.memory_space<vmem>>, vector<32x1xf32>
    %29 = vector.broadcast %28 : vector<32x1xf32> to vector<32x2xf32>
    %30 = arith.addf %27, %29 : vector<32x2xf32>
    %cst_14 = arith.constant 0.000000e+00 : f32
    %31 = vector.broadcast %cst_14 : f32 to vector<32x2xf32>
    %32 = arith.maximumf %30, %31 : vector<32x2xf32>
    %c0_15 = arith.constant 0 : index
    %c0_16 = arith.constant 0 : index
    %33 = vector.load %arg3[%c0_15, %c0_16] : memref<16x32xf32, #tpu.memory_space<vmem>>, vector<16x32xf32>
    %cst_17 = arith.constant dense<0.000000e+00> : vector<16x2xf32>
    %34 = tpu.matmul %33, %32, %cst_17 {dimension_numbers = #tpu.dot_dimension_numbers<[1], [0], [0], [1], [0, 0, 1, 1], [], []>} : vector<16x32xf32>, vector<32x2xf32>, vector<16x2xf32> -> vector<16x2xf32>
    %c48 = arith.constant 48 : index
    %c0_18 = arith.constant 0 : index
    %35 = vector.load %arg4[%c48, %c0_18] : memref<64x1xf32, #tpu.memory_space<vmem>>, vector<16x1xf32>
    %36 = vector.broadcast %35 : vector<16x1xf32> to vector<16x2xf32>
    %37 = arith.addf %34, %36 : vector<16x2xf32>
    %38 = vector.extract_strided_slice %37 {offsets = [0, 0], sizes = [8, 2], strides = [1, 1]} : vector<16x2xf32> to vector<8x2xf32>
    %39 = vector.extract_strided_slice %37 {offsets = [8, 0], sizes = [8, 2], strides = [1, 1]} : vector<16x2xf32> to vector<8x2xf32>
    %40 = arith.maximumf %38, %39 : vector<8x2xf32>
    %41 = arith.subf %38, %40 : vector<8x2xf32>
    %42 = math.exp %41 : vector<8x2xf32>
    %43 = arith.subf %39, %40 : vector<8x2xf32>
    %44 = math.exp %43 : vector<8x2xf32>
    %45 = arith.addf %42, %44 : vector<8x2xf32>
    %46 = tpu.reciprocal %45 {approx = true} : vector<8x2xf32> -> vector<8x2xf32>
    %47 = arith.mulf %45, %46 : vector<8x2xf32>
    %cst_19 = arith.constant 2.000000e+00 : f32
    %48 = vector.broadcast %cst_19 : f32 to vector<8x2xf32>
    %49 = arith.subf %48, %47 : vector<8x2xf32>
    %50 = arith.mulf %46, %49 : vector<8x2xf32>
    %51 = arith.mulf %42, %50 : vector<8x2xf32>
    %52 = arith.mulf %44, %50 : vector<8x2xf32>
    %53 = vector.extract_strided_slice %51 {offsets = [0, 0], sizes = [8, 1], strides = [1, 1]} : vector<8x2xf32> to vector<8x1xf32>
    %54 = vector.shape_cast %53 : vector<8x1xf32> to vector<8x1xf32>
    %55 = vector.broadcast %54 : vector<8x1xf32> to vector<8x256xf32>
    %56 = vector.extract_strided_slice %51 {offsets = [0, 1], sizes = [8, 1], strides = [1, 1]} : vector<8x2xf32> to vector<8x1xf32>
    %57 = vector.shape_cast %56 : vector<8x1xf32> to vector<8x1xf32>
    %58 = vector.broadcast %57 : vector<8x1xf32> to vector<8x256xf32>
    %59 = tpu.concatenate %55, %58 in 1 : vector<8x256xf32>, vector<8x256xf32> -> vector<8x512xf32>
    %60 = vector.extract_strided_slice %52 {offsets = [0, 0], sizes = [8, 1], strides = [1, 1]} : vector<8x2xf32> to vector<8x1xf32>
    %61 = vector.shape_cast %60 : vector<8x1xf32> to vector<8x1xf32>
    %62 = vector.broadcast %61 : vector<8x1xf32> to vector<8x256xf32>
    %63 = vector.extract_strided_slice %52 {offsets = [0, 1], sizes = [8, 1], strides = [1, 1]} : vector<8x2xf32> to vector<8x1xf32>
    %64 = vector.shape_cast %63 : vector<8x1xf32> to vector<8x1xf32>
    %65 = vector.broadcast %64 : vector<8x1xf32> to vector<8x256xf32>
    %66 = tpu.concatenate %62, %65 in 1 : vector<8x256xf32>, vector<8x256xf32> -> vector<8x512xf32>
    %67 = vector.extract_strided_slice %7 {offsets = [0, 0], sizes = [8, 512], strides = [1, 1]} : vector<16x512xf32> to vector<8x512xf32>
    %68 = arith.mulf %67, %59 : vector<8x512xf32>
    %69 = vector.extract_strided_slice %7 {offsets = [8, 0], sizes = [8, 512], strides = [1, 1]} : vector<16x512xf32> to vector<8x512xf32>
    %70 = arith.mulf %69, %66 : vector<8x512xf32>
    %71 = arith.addf %68, %70 : vector<8x512xf32>
    %c0_20 = arith.constant 0 : index
    %c0_21 = arith.constant 0 : index
    %72 = vector.load %arg5[%c0_20, %c0_21] : memref<8x512xf32, #tpu.memory_space<vmem>>, vector<8x512xf32>
    tpu.vector_store %arg5[%c0_20, %c0_21], %71 {strides = array<i32>} : memref<8x512xf32, #tpu.memory_space<vmem>>, vector<8x512xf32>,
    return
  }
}

</mosaic_0001>

<bundles_post_ra>
// kernel: splat_conv2d.1
= control target key start
LH: loop header
LB: loop body
LE: loop exit
PB: predicated region body
PF: predicated region fallthrough
CT: control target
= control target key end

     0   :  { %v239_v0 = vlaneseq  ;;  %v1292_v4 = vmov 0.0   ;;  %v1293_v9 = vmov 0   ;;  %vm1877_vm14 = vcmask 588800   ;;  %s1871_s0 = inlined_call_operand.vmem [shape: f32[72,512], index: 0, kind: input, shape index: {}]   ;;  %s1872_s4 = inlined_call_operand.vmem [shape: f32[64,1], index: 4, kind: input, shape index: {}]   ;;  %s1873_s1 = inlined_call_operand.vmem [shape: f32[16,72], index: 1, kind: input, shape index: {}]   ;;  %s1874_s2 = inlined_call_operand.vmem [shape: f32[32,8], index: 2, kind: input, shape index: {}]   ;;  %s1875_s3 = inlined_call_operand.vmem [shape: f32[16,32], index: 3, kind: input, shape index: {}]   ;;  %s1876_s5 = inlined_call_operand.vmem [shape: f32[8,512], index: 5, kind: output, shape index: {}]  }
   0x1   :  { %v23_v1 = vld [vmem:[%s1871_s0 + $0x8] sm:$0xff]  ;;  %v25_v3 = vld [vmem:[%s1871_s0 + $0x18] sm:$0xff]  ;;  %141 = vmatprep.mubr.f32.mxu0 %v1292_v4  ;;  %218 = vmatprep.mubr.f32.mxu1 %v1292_v4  ;;  %v22_v7 = vld [vmem:[%s1871_s0] sm:$0xff] }
   0x2   :  { %v27_v2 = vld [vmem:[%s1871_s0 + $0x28] sm:$0xff]  ;;  %v29_v6 = vld [vmem:[%s1871_s0 + $0x38] sm:$0xff]  ;;  %v26_v8 = vld [vmem:[%s1871_s0 + $0x20] sm:$0xff]  ;;  %1282 = vset.pattern.permute.xlu0 %v1293_v9  ;;  %v305_v10 = vand.u32 127, %v239_v0  ;;  %1283 = vset.pattern.permute.xlu1 %v1293_v9  ;;  %v1364_v20 = vshrl.u32 %v239_v0, 7 }
   0x3   :  { %v1174_v5 = vpack.c.bf16 %v27_v2, %v23_v1  ;;  %v1190_v11 = vpack.c.bf16 %v29_v6, %v25_v3  ;;  %v1176_v12 = vpack.c.bf16 %v26_v8, %v22_v7  ;;  %v24_v13 = vld [vmem:[%s1871_s0 + $0x10] sm:$0xff]  ;;  %v31_v15 = vld [vmem:[%s1871_s0 + $0x48] sm:$0xff]  ;;  %v33_v18 = vld [vmem:[%s1871_s0 + $0x58] sm:$0xff] }
   0x4   :  { %v28_v14 = vld [vmem:[%s1871_s0 + $0x30] sm:$0xff]  ;;  %v35_v17 = vld [vmem:[%s1871_s0 + $0x68] sm:$0xff]  ;;  %v37_v19 = vld [vmem:[%s1871_s0 + $0x78] sm:$0xff]  ;;  %v371_v26 = vadd.s32 1, %v305_v10  ;;  %v256_v40 = vadd.s32 128, %v1364_v20  ;;  %v1403_v41 = vmul.u32 256, %v305_v10 }
   0x5   :  { %1175 = vmatprep.subr.bf16.mxu0 %v1174_v5  ;;  %v1192_v16 = vpack.c.bf16 %v28_v14, %v24_v13  ;;  %1191 = vmatprep.subr.bf16.mxu1 %v1190_v11  ;;  %v1178_v21 = vpack.c.bf16 %v35_v17, %v31_v15  ;;  %v1194_v22 = vpack.c.bf16 %v37_v19, %v33_v18  ;;  %v30_v23 = vld [vmem:[%s1871_s0 + $0x40] sm:$0xff]  ;;  %v32_v25 = vld [vmem:[%s1871_s0 + $0x50] sm:$0xff]  ;;  %v39_v29 = vld [vmem:[%s1871_s0 + $0x88] sm:$0xff]  ;;  %v257_v47 = vadd.s32 136, %v1364_v20 }
   0x6   :  { %1177 = vmatpush1.bf16.msra.mxu0 %v1176_v12  ;;  %v34_v24 = vld [vmem:[%s1871_s0 + $0x60] sm:$0xff]  ;;  %v36_v28 = vld [vmem:[%s1871_s0 + $0x70] sm:$0xff]  ;;  %v43_v30 = vld [vmem:[%s1871_s0 + $0xa8] sm:$0xff]  ;;  %v1405_v42 = vmul.u32 256, %v371_v26  ;;  %v288_v56 = vadd.s32 384, %v1364_v20  ;;  %vm323_vm0 = vcmp.ge.s32.totalorder %v256_v40, %v1403_v41  ;;  %v289_v57 = vadd.s32 392, %v1364_v20 }
   0x7   :  { %1193 = vmatpush1.bf16.msra.mxu1 %v1192_v16  ;;  %v1180_v27 = vpack.c.bf16 %v34_v24, %v30_v23  ;;  %1179 = vmatprep.subr.bf16.mxu0 %v1178_v21  ;;  %v1196_v31 = vpack.c.bf16 %v36_v28, %v32_v25  ;;  %v1182_v32 = vpack.c.bf16 %v43_v30, %v39_v29  ;;  %v41_v33 = vld [vmem:[%s1871_s0 + $0x98] sm:$0xff]  ;;  %v38_v35 = vld [vmem:[%s1871_s0 + $0x80] sm:$0xff]  ;;  %v40_v38 = vld [vmem:[%s1871_s0 + $0x90] sm:$0xff]  ;;  %v241_v63 = vadd.s32 8, %v1364_v20 }
   0x8   :  { %1195 = vmatprep.subr.bf16.mxu1 %v1194_v22  ;;  %v45_v34 = vld [vmem:[%s1871_s0 + $0xb8] sm:$0xff]  ;;  %v42_v37 = vld [vmem:[%s1871_s0 + $0xa0] sm:$0xff]  ;;  %v44_v39 = vld [vmem:[%s1871_s0 + $0xb0] sm:$0xff]  ;;  %vm389_vm1 = vcmp.lt.s32.totalorder %v256_v40, %v1405_v42  ;;  %vm324_vm2 = vcmp.ge.s32.totalorder %v257_v47, %v1403_v41  ;;  %vm390_vm3 = vcmp.lt.s32.totalorder %v257_v47, %v1405_v42  ;;  %vm355_vm5 = vcmp.ge.s32.totalorder %v288_v56, %v1403_v41 }
   0x9   :  { %v1198_v36 = vpack.c.bf16 %v45_v34, %v41_v33  ;;  %v1184_v43 = vpack.c.bf16 %v42_v37, %v38_v35  ;;  %v47_v44 = vld [vmem:[%s1871_s0 + $0xc8] sm:$0xff]  ;;  %v49_v46 = vld [vmem:[%s1871_s0 + $0xd8] sm:$0xff]  ;;  %v1200_v48 = vpack.c.bf16 %v44_v39, %v40_v38  ;;  %v46_v51 = vld [vmem:[%s1871_s0 + $0xc0] sm:$0xff]  ;;  %vm421_vm6 = vcmp.lt.s32.totalorder %v288_v56, %v1405_v42 }
   0xa   :  { %1181 = vmatpush1.bf16.msra.mxu0 %v1180_v27  ;;  %v51_v45 = vld [vmem:[%s1871_s0 + $0xe8] sm:$0xff]  ;;  %v53_v50 = vld [vmem:[%s1871_s0 + $0xf8] sm:$0xff]  ;;  %v50_v52 = vld [vmem:[%s1871_s0 + $0xe0] sm:$0xff]  ;;  %vm356_vm8 = vcmp.ge.s32.totalorder %v289_v57, %v1403_v41  ;;  %vm422_vm9 = vcmp.lt.s32.totalorder %v289_v57, %v1405_v42  ;;  %v272_v3 = vadd.s32 256, %v1364_v20  ;;  %vm307_vm12 = vcmp.ge.s32.totalorder %v1364_v20, %v1403_v41 }
   0xb   :  { %1197 = vmatpush1.bf16.msra.mxu1 %v1196_v31  ;;  %1183 = vmatprep.subr.bf16.mxu0 %v1182_v32  ;;  %v1186_v49 = vpack.c.bf16 %v51_v45, %v47_v44  ;;  %v1202_v53 = vpack.c.bf16 %v53_v50, %v49_v46  ;;  %v48_v54 = vld [vmem:[%s1871_s0 + $0xd0] sm:$0xff]  ;;  %v1188_v58 = vpack.c.bf16 %v50_v52, %v46_v51  ;;  %v58_v59 = vld [vmem:[%s1872_s4] sm:$0xff]  ;;  %v55_v61 = vld [vmem:[%s1871_s0 + $0x108] sm:$0xff]  ;;  %v273_v7 = vadd.s32 264, %v1364_v20 }
   0xc   :  { %1199 = vmatprep.subr.bf16.mxu1 %v1198_v36  ;;  %v52_v55 = vld [vmem:[%s1871_s0 + $0xf0] sm:$0xff]  ;;  %62 = vperm.xlu0 %1282, %v58_v59   ;;  %vm1444_vm4 = vmand %vm323_vm0, %vm389_vm1  ;;  %v57_v0 = vld [vmem:[%s1871_s0 + $0x118] sm:$0xff]  ;;  %vm373_vm13 = vcmp.lt.s32.totalorder %v1364_v20, %v1405_v42  ;;  %vm308_vm0 = vcmp.ge.s32.totalorder %v241_v63, %v1403_v41  ;;  %vm374_vm1 = vcmp.lt.s32.totalorder %v241_v63, %v1405_v42  ;;  %v258_v11 = vadd.s32 144, %v1364_v20 }
   0xd   :  { %v1204_v60 = vpack.c.bf16 %v52_v55, %v48_v54  ;;  %v59_v1 = vld [vmem:[%s1872_s4 + $0x8] sm:$0xff]  ;;  %vm1459_vm7 = vmand %vm324_vm2, %vm390_vm3  ;;  %v54_v5 = vld [vmem:[%s1871_s0 + $0x100] sm:$0xff]  ;;  %v259_v14 = vadd.s32 152, %v1364_v20  ;;  %v290_v17 = vadd.s32 400, %v1364_v20  ;;  %v291_v19 = vadd.s32 408, %v1364_v20 }
   0xe   :  { %1185 = vmatpush1.bf16.msra.mxu0 %v1184_v43  ;;  %vm1206_vm10 = vmpackc.low %vm1459_vm7, %vm1444_vm4  ;;  %v56_v8 = vld [vmem:[%s1871_s0 + $0x110] sm:$0xff]  ;;  %v20_v9 = vld [vmem:[%s1873_s1] sm:$0xff]  ;;  %v1294_v22 = vmov 0.00390625|0.00390625   ;;  %v243_v23 = vadd.s32 24, %v1364_v20  ;;  %v274_v24 = vadd.s32 272, %v1364_v20 }
   0xf   :  { %1201 = vmatpush1.bf16.msra.mxu1 %v1200_v48  ;;  %1187 = vmatprep.subr.bf16.mxu0 %v1186_v49  ;;  %vm1475_vm11 = vmand %vm355_vm5, %vm421_vm6  ;;  %v722_v12 = vld [vmem:[%s1872_s4 + $0x20] sm:$0xff]  ;;  %vm339_vm5 = vcmp.ge.s32.totalorder %v272_v3, %v1403_v41  ;;  %vm405_vm6 = vcmp.lt.s32.totalorder %v272_v3, %v1405_v42  ;;  %v21_v16 = vld [vmem:[%s1873_s1 + $0x8] sm:$0xff]  ;;  %v275_v25 = vadd.s32 280, %v1364_v20  ;;  %v260_v26 = vadd.s32 160, %v1364_v20 }
  0x10   :  { %1203 = vmatprep.subr.bf16.mxu1 %v1202_v53  ;;  %67 = vperm.xlu0 %1282, %v59_v1   ;;  %vm1494_vm15 = vmand %vm356_vm8, %vm422_vm9  ;;  %vm340_vm9 = vcmp.ge.s32.totalorder %v273_v7, %v1403_v41  ;;  %v848_v21 = vld [vmem:[%s1872_s4 + $0x30] sm:$0xff]  ;;  %v261_v27 = vadd.s32 168, %v1364_v20  ;;  %v292_v28 = vadd.s32 416, %v1364_v20  ;;  %v293_v29 = vadd.s32 424, %v1364_v20 }
  0x11   :  { %vm1238_vm2 = vmpackc.low %vm1494_vm15, %vm1475_vm11  ;;  %vm1895_vm11 = vcmp.ge.s32.totalorder %v258_v11, %v1403_v41  ;;  %v244_v30 = vadd.s32 32, %v1364_v20  ;;  %v245_v31 = vadd.s32 40, %v1364_v20  ;;  %v276_v32 = vadd.s32 288, %v1364_v20 }
  0x12   :  { %1189 = vmatpush1.bf16.msra.mxu0 %v1188_v58  ;;  %vm1511_vm3 = vmand %vm307_vm12, %vm373_vm13  ;;  %vm406_vm12 = vcmp.lt.s32.totalorder %v273_v7, %v1405_v42  ;;  %vm1892_vm13 = vcmask 588800   ;;  %v277_v33 = vadd.s32 296, %v1364_v20  ;;  %v262_v34 = vadd.s32 176, %v1364_v20 }
  0x13   :  { %1205 = vmatpush1.bf16.msra.mxu1 %v1204_v60  ;;  %93 = vmatprep.subr.mxu0 %v55_v61  ;;  %vm1519_vm8 = vmand %vm308_vm0, %vm374_vm1  ;;  %vm392_vm1 = vcmp.lt.s32.totalorder %v259_v14, %v1405_v42  ;;  %v263_v35 = vadd.s32 184, %v1364_v20  ;;  %v294_v36 = vadd.s32 432, %v1364_v20  ;;  %v295_v37 = vadd.s32 440, %v1364_v20 }
  0x14   :  { %170 = vmatprep.subr.mxu1 %v57_v0  ;;  %736 = vperm.xlu0 %1282, %v722_v12   ;;  %vm1538_vm0 = vmand %vm339_vm5, %vm405_vm6  ;;  %vm326_vm6 = vcmp.ge.s32.totalorder %v259_v14, %v1403_v41  ;;  %v246_v38 = vadd.s32 48, %v1364_v20  ;;  %v247_v39 = vadd.s32 56, %v1364_v20  ;;  %v278_v40 = vadd.s32 304, %v1364_v20 }
  0x15   :  { %vm470_vm5 = vmand %vm340_vm9, %vm406_vm12  ;;  %vm423_vm9 = vcmp.lt.s32.totalorder %v290_v17, %v1405_v42  ;;  %v279_v43 = vadd.s32 312, %v1364_v20  ;;  %v264_v44 = vadd.s32 192, %v1364_v20  ;;  %v265_v45 = vadd.s32 200, %v1364_v20 }
  0x16   :  { %94 = vmatpush1.msra.mxu0 %v54_v5  ;;  %vm1240_vm4 = vmpackc.low %vm470_vm5, %vm1538_vm0  ;;  %vm424_vm0 = vcmp.lt.s32.totalorder %v291_v19, %v1405_v42  ;;  %v296_v46 = vadd.s32 448, %v1364_v20  ;;  %v297_v47 = vadd.s32 456, %v1364_v20  ;;  %v248_v48 = vadd.s32 64, %v1364_v20 }
  0x17   :  { %171 = vmatpush1.msra.mxu1 %v56_v8  ;;  %994 = vmatmul.mubr.msk.f32.vlgmr.msra.gmra.mrb[0].mxu0 %vm1877_vm14, %v20_v9  ;;  %vm1893_vm7 = vmmov %vm1892_vm13  ;;  %v249_v49 = vadd.s32 72, %v1364_v20  ;;  %v280_v50 = vadd.s32 320, %v1364_v20  ;;  %v281_v51 = vadd.s32 328, %v1364_v20  ;;  %v266_v52 = vadd.s32 208, %v1364_v20 }
  0x18   :  { %996 = vmatmul.mubr.msk.f32.vlgmr.msra.gmra.mrb[0].mxu1 %vm1877_vm14, %v20_v9  ;;  %147 = vmatprep.mubr.f32.mxu0 %v1292_v4  ;;  %vm391_vm14 = vcmp.lt.s32.totalorder %v258_v11, %v1405_v42  ;;  %vm456_vm12 = vmand %vm326_vm6, %vm392_vm1  ;;  %vm376_vm1 = vcmp.lt.s32.totalorder %v243_v23, %v1405_v42  ;;  %v267_v53 = vadd.s32 216, %v1364_v20  ;;  %v298_v54 = vadd.s32 464, %v1364_v20 }
  0x19   :  { %224 = vmatprep.mubr.f32.mxu1 %v1292_v4  ;;  %1207 = vmatprep.subr.msk.bf16.mxu0 %vm1206_vm10, %v1294_v22  ;;  %v242_v4 = vadd.s32 16, %v1364_v20  ;;  %vm1894_vm10 = vmpackc.low %vm1519_vm8, %vm1511_vm3  ;;  %v299_v55 = vadd.s32 472, %v1364_v20  ;;  %v250_v56 = vadd.s32 80, %v1364_v20  ;;  %v251_v57 = vadd.s32 88, %v1364_v20 }
  0x1a   :  { %1239 = vmatprep.subr.msk.bf16.mxu1 %vm1238_vm2, %v1294_v22  ;;  %1209 = vmatpush3.bf16.msk.msra.mxu0 %vm1894_vm10, %v1294_v22  ;;  %vm455_vm15 = vmand %vm1895_vm11, %vm391_vm14  ;;  %vm357_vm2 = vcmp.ge.s32.totalorder %v290_v17, %v1403_v41  ;;  %vm341_vm11 = vcmp.ge.s32.totalorder %v274_v24, %v1403_v41  ;;  %v282_v58 = vadd.s32 336, %v1364_v20  ;;  %v283_v59 = vadd.s32 344, %v1364_v20 }
  0x1b   :  { %995 = vmatmul.mubr.msk.f32.gmra.mrb[2].mxu0 %vm1892_vm13, %v21_v16  ;;  %852 = vperm.xlu0 %1282, %v848_v21   ;;  %vm358_vm13 = vcmp.ge.s32.totalorder %v291_v19, %v1403_v41  ;;  %vm1210_vm5 = vmpackc.low %vm456_vm12, %vm455_vm15  ;;  %vm309_vm3 = vcmp.ge.s32.totalorder %v242_v4, %v1403_v41  ;;  %vm375_vm8 = vcmp.lt.s32.totalorder %v242_v4, %v1405_v42  ;;  %v268_v60 = vadd.s32 224, %v1364_v20 }
  0x1c   :  { %997 = vmatmul.mubr.msk.f32.gmra.mrb[2].mxu1 %vm1893_vm7, %v21_v16  ;;  %1211 = vmatprep.subr.msk.bf16.mxu0 %vm1210_vm5, %v1294_v22  ;;  %vm487_vm14 = vmand %vm357_vm2, %vm423_vm9  ;;  %vm407_vm15 = vcmp.lt.s32.totalorder %v274_v24, %v1405_v42  ;;  %vm342_vm9 = vcmp.ge.s32.totalorder %v275_v25, %v1403_v41  ;;  %vm408_vm12 = vcmp.lt.s32.totalorder %v275_v25, %v1405_v42  ;;  %v269_v61 = vadd.s32 232, %v1364_v20 }
  0x1d   :  { %1241 = vmatpush3.bf16.msk.msra.mxu1 %vm1240_vm4, %v1294_v22  ;;  %vm488_vm7 = vmand %vm358_vm13, %vm424_vm0  ;;  %vm310_vm4 = vcmp.ge.s32.totalorder %v243_v23, %v1403_v41  ;;  %vm327_vm5 = vcmp.ge.s32.totalorder %v260_v26, %v1403_v41  ;;  %v300_v62 = vadd.s32 480, %v1364_v20  ;;  %v301_v63 = vadd.s32 488, %v1364_v20 }
  0x1e   :  { %vm1242_vm6 = vmpackc.low %vm488_vm7, %vm487_vm14  ;;  %vm393_vm14 = vcmp.lt.s32.totalorder %v260_v26, %v1405_v42  ;;  %vm394_vm7 = vcmp.lt.s32.totalorder %v261_v27, %v1405_v42  ;;  %v252_v0 = vadd.s32 96, %v1364_v20  ;;  %v253_v1 = vadd.s32 104, %v1364_v20 }
  0x1f   :  { %1243 = vmatprep.subr.msk.bf16.mxu1 %vm1242_vm6, %v1294_v22  ;;  %vm439_vm10 = vmand %vm309_vm3, %vm375_vm8  ;;  %vm328_vm8 = vcmp.ge.s32.totalorder %v261_v27, %v1403_v41  ;;  %vm359_vm6 = vcmp.ge.s32.totalorder %v292_v28, %v1403_v41  ;;  %v284_v2 = vadd.s32 352, %v1364_v20  ;;  %v285_v3 = vadd.s32 360, %v1364_v20 }
  0x20   :  { %vm440_vm2 = vmand %vm310_vm4, %vm376_vm1  ;;  %v270_v5 = vadd.s32 240, %v1364_v20  ;;  %v271_v6 = vadd.s32 248, %v1364_v20  ;;  %v302_v7 = vadd.s32 496, %v1364_v20  ;;  %v303_v8 = vadd.s32 504, %v1364_v20 }
  0x21   :  { %vm1212_vm13 = vmpackc.low %vm440_vm2, %vm439_vm10  ;;  %vm425_vm10 = vcmp.lt.s32.totalorder %v292_v28, %v1405_v42  ;;  %vm426_vm2 = vcmp.lt.s32.totalorder %v293_v29, %v1405_v42  ;;  %v254_v9 = vadd.s32 112, %v1364_v20  ;;  %v255_v10 = vadd.s32 120, %v1364_v20 }
  0x22   :  { %1213 = vmatpush3.bf16.msk.msra.mxu0 %vm1212_vm13, %v1294_v22  ;;  %vm471_vm0 = vmand %vm341_vm11, %vm407_vm15  ;;  %vm360_vm15 = vcmp.ge.s32.totalorder %v293_v29, %v1403_v41  ;;  %vm311_vm13 = vcmp.ge.s32.totalorder %v244_v30, %v1403_v41  ;;  %v286_v11 = vadd.s32 368, %v1364_v20  ;;  %v287_v12 = vadd.s32 376, %v1364_v20 }
  0x23   :  { %vm472_vm3 = vmand %vm342_vm9, %vm408_vm12 }
  0x24   :  { %vm1244_vm4 = vmpackc.low %vm472_vm3, %vm471_vm0  ;;  %vm377_vm0 = vcmp.lt.s32.totalorder %v244_v30, %v1405_v42  ;;  %vm378_vm3 = vcmp.lt.s32.totalorder %v245_v31, %v1405_v42 }
  0x25   :  { %1245 = vmatpush3.bf16.msk.msra.mxu1 %vm1244_vm4, %v1294_v22  ;;  %vm457_vm1 = vmand %vm327_vm5, %vm393_vm14  ;;  %vm312_vm14 = vcmp.ge.s32.totalorder %v245_v31, %v1403_v41  ;;  %vm343_vm4 = vcmp.ge.s32.totalorder %v276_v32, %v1403_v41 }
  0x26   :  { %vm458_vm11 = vmand %vm328_vm8, %vm394_vm7 }
  0x27   :  { %vm1214_vm9 = vmpackc.low %vm458_vm11, %vm457_vm1  ;;  %vm409_vm1 = vcmp.lt.s32.totalorder %v276_v32, %v1405_v42  ;;  %vm410_vm11 = vcmp.lt.s32.totalorder %v277_v33, %v1405_v42 }
  0x28   :  { %1215 = vmatprep.subr.msk.bf16.mxu0 %vm1214_vm9, %v1294_v22  ;;  %vm489_vm12 = vmand %vm359_vm6, %vm425_vm10  ;;  %vm344_vm10 = vcmp.ge.s32.totalorder %v277_v33, %v1403_v41  ;;  %vm329_vm9 = vcmp.ge.s32.totalorder %v262_v34, %v1403_v41 }
  0x29   :  { %vm490_vm5 = vmand %vm360_vm15, %vm426_vm2 }
  0x2a   :  { %vm1246_vm8 = vmpackc.low %vm490_vm5, %vm489_vm12  ;;  %vm395_vm12 = vcmp.lt.s32.totalorder %v262_v34, %v1405_v42  ;;  %vm396_vm5 = vcmp.lt.s32.totalorder %v263_v35, %v1405_v42 }
  0x2b   :  { %1247 = vmatprep.subr.msk.bf16.mxu1 %vm1246_vm8, %v1294_v22  ;;  %vm441_vm7 = vmand %vm311_vm13, %vm377_vm0  ;;  %vm330_vm0 = vcmp.ge.s32.totalorder %v263_v35, %v1403_v41  ;;  %vm361_vm8 = vcmp.ge.s32.totalorder %v294_v36, %v1403_v41 }
  0x2c   :  { %vm442_vm6 = vmand %vm312_vm14, %vm378_vm3 }
  0x2d   :  { %vm1216_vm15 = vmpackc.low %vm442_vm6, %vm441_vm7  ;;  %vm427_vm7 = vcmp.lt.s32.totalorder %v294_v36, %v1405_v42  ;;  %vm428_vm6 = vcmp.lt.s32.totalorder %v295_v37, %v1405_v42  ;;  %v716_v36 = vld [vmem:[%s1874_s2] sm:$0xff] }
  0x2e   :  { %1217 = vmatpush3.bf16.msk.msra.mxu0 %vm1216_vm15, %v1294_v22  ;;  %vm473_vm2 = vmand %vm343_vm4, %vm409_vm1  ;;  %vm362_vm1 = vcmp.ge.s32.totalorder %v295_v37, %v1403_v41  ;;  %vm313_vm15 = vcmp.ge.s32.totalorder %v246_v38, %v1403_v41  ;;  %v720_v37 = vld [vmem:[%s1872_s4 + $0x10] sm:$0xff] }
  0x2f   :  { %vm474_vm13 = vmand %vm344_vm10, %vm410_vm11  ;;  %726 = vperm.xlu1 %1283, %v720_v37  }
  0x30   :  { %vm1248_vm14 = vmpackc.low %vm474_vm13, %vm473_vm2  ;;  %vm379_vm2 = vcmp.lt.s32.totalorder %v246_v38, %v1405_v42  ;;  %vm380_vm13 = vcmp.lt.s32.totalorder %v247_v39, %v1405_v42  ;;  %v721_v38 = vld [vmem:[%s1872_s4 + $0x18] sm:$0xff] }
  0x31   :  { %1249 = vmatpush3.bf16.msk.msra.mxu1 %vm1248_vm14, %v1294_v22  ;;  %vm459_vm3 = vmand %vm329_vm9, %vm395_vm12  ;;  %vm314_vm12 = vcmp.ge.s32.totalorder %v247_v39, %v1403_v41  ;;  %vm345_vm14 = vcmp.ge.s32.totalorder %v278_v40, %v1403_v41  ;;  %v723_v39 = vld [vmem:[%s1872_s4 + $0x28] sm:$0xff] }
  0x32   :  { %vm460_vm4 = vmand %vm330_vm0, %vm396_vm5 }
  0x33   :  { %vm1218_vm10 = vmpackc.low %vm460_vm4, %vm459_vm3  ;;  %vm411_vm3 = vcmp.lt.s32.totalorder %v278_v40, %v1405_v42  ;;  %vm412_vm4 = vcmp.lt.s32.totalorder %v279_v43, %v1405_v42  ;;  %731 = vperm.xlu1 %1283, %v721_v38   ;;  %v849_v40 = vld [vmem:[%s1872_s4 + $0x38] sm:$0xff] }
  0x34   :  { %1219 = vmatprep.subr.msk.bf16.mxu0 %vm1218_vm10, %v1294_v22  ;;  %vm491_vm11 = vmand %vm361_vm8, %vm427_vm7  ;;  %vm346_vm7 = vcmp.ge.s32.totalorder %v279_v43, %v1403_v41  ;;  %vm331_vm10 = vcmp.ge.s32.totalorder %v264_v44, %v1403_v41 }
  0x35   :  { %vm492_vm9 = vmand %vm362_vm1, %vm428_vm6 }
  0x36   :  { %vm1250_vm0 = vmpackc.low %vm492_vm9, %vm491_vm11  ;;  %vm397_vm11 = vcmp.lt.s32.totalorder %v264_v44, %v1405_v42  ;;  %vm398_vm9 = vcmp.lt.s32.totalorder %v265_v45, %v1405_v42 }
  0x37   :  { %1251 = vmatprep.subr.msk.bf16.mxu1 %vm1250_vm0, %v1294_v22  ;;  %vm443_vm5 = vmand %vm313_vm15, %vm379_vm2  ;;  %vm332_vm2 = vcmp.ge.s32.totalorder %v265_v45, %v1403_v41  ;;  %vm363_vm0 = vcmp.ge.s32.totalorder %v296_v46, %v1403_v41  ;;  %741 = vperm.xlu1 %1283, %v723_v39  }
  0x38   :  { %vm444_vm8 = vmand %vm314_vm12, %vm380_vm13 }
  0x39   :  { %vm1220_vm1 = vmpackc.low %vm444_vm8, %vm443_vm5  ;;  %vm429_vm5 = vcmp.lt.s32.totalorder %v296_v46, %v1405_v42  ;;  %vm430_vm8 = vcmp.lt.s32.totalorder %v297_v47, %v1405_v42 }
  0x3a   :  { %1221 = vmatpush3.bf16.msk.msra.mxu0 %vm1220_vm1, %v1294_v22  ;;  %vm475_vm6 = vmand %vm345_vm14, %vm411_vm3  ;;  %vm364_vm3 = vcmp.ge.s32.totalorder %v297_v47, %v1403_v41  ;;  %vm315_vm1 = vcmp.ge.s32.totalorder %v248_v48, %v1403_v41 }
  0x3b   :  { %vm476_vm15 = vmand %vm346_vm7, %vm412_vm4  ;;  %857 = vperm.xlu1 %1283, %v849_v40  }
  0x3c   :  { %vm1252_vm12 = vmpackc.low %vm476_vm15, %vm475_vm6  ;;  %vm381_vm6 = vcmp.lt.s32.totalorder %v248_v48, %v1405_v42  ;;  %vm382_vm15 = vcmp.lt.s32.totalorder %v249_v49, %v1405_v42 }
  0x3d   :  { %1253 = vmatpush3.bf16.msk.msra.mxu1 %vm1252_vm12, %v1294_v22  ;;  %vm461_vm13 = vmand %vm331_vm10, %vm397_vm11  ;;  %vm316_vm11 = vcmp.ge.s32.totalorder %v249_v49, %v1403_v41  ;;  %vm347_vm12 = vcmp.ge.s32.totalorder %v280_v50, %v1403_v41 }
  0x3e   :  { %vm462_vm14 = vmand %vm332_vm2, %vm398_vm9 }
  0x3f   :  { %vm1222_vm7 = vmpackc.low %vm462_vm14, %vm461_vm13  ;;  %vm413_vm13 = vcmp.lt.s32.totalorder %v280_v50, %v1405_v42  ;;  %vm414_vm14 = vcmp.lt.s32.totalorder %v281_v51, %v1405_v42 }
  0x40   :  { %1223 = vmatprep.subr.msk.bf16.mxu0 %vm1222_vm7, %v1294_v22  ;;  %vm493_vm4 = vmand %vm363_vm0, %vm429_vm5  ;;  %vm348_vm5 = vcmp.ge.s32.totalorder %v281_v51, %v1403_v41  ;;  %vm333_vm7 = vcmp.ge.s32.totalorder %v266_v52, %v1403_v41 }
  0x41   :  { %vm494_vm10 = vmand %vm364_vm3, %vm430_vm8 }
  0x42   :  { %vm1254_vm2 = vmpackc.low %vm494_vm10, %vm493_vm4  ;;  %vm399_vm4 = vcmp.lt.s32.totalorder %v266_v52, %v1405_v42  ;;  %vm400_vm10 = vcmp.lt.s32.totalorder %v267_v53, %v1405_v42 }
  0x43   :  { %1255 = vmatprep.subr.msk.bf16.mxu1 %vm1254_vm2, %v1294_v22  ;;  %vm445_vm9 = vmand %vm315_vm1, %vm381_vm6  ;;  %vm334_vm6 = vcmp.ge.s32.totalorder %v267_v53, %v1403_v41  ;;  %vm365_vm2 = vcmp.ge.s32.totalorder %v298_v54, %v1403_v41 }
  0x44   :  { %vm446_vm0 = vmand %vm316_vm11, %vm382_vm15 }
  0x45   :  { %vm1224_vm3 = vmpackc.low %vm446_vm0, %vm445_vm9  ;;  %vm431_vm9 = vcmp.lt.s32.totalorder %v298_v54, %v1405_v42  ;;  %vm432_vm0 = vcmp.lt.s32.totalorder %v299_v55, %v1405_v42 }
  0x46   :  { %1225 = vmatpush3.bf16.msk.msra.mxu0 %vm1224_vm3, %v1294_v22  ;;  %vm477_vm8 = vmand %vm347_vm12, %vm413_vm13  ;;  %vm366_vm13 = vcmp.ge.s32.totalorder %v299_v55, %v1403_v41  ;;  %vm317_vm3 = vcmp.ge.s32.totalorder %v250_v56, %v1403_v41 }
  0x47   :  { %vm478_vm1 = vmand %vm348_vm5, %vm414_vm14 }
  0x48   :  { %vm1256_vm11 = vmpackc.low %vm478_vm1, %vm477_vm8  ;;  %vm383_vm8 = vcmp.lt.s32.totalorder %v250_v56, %v1405_v42  ;;  %vm384_vm1 = vcmp.lt.s32.totalorder %v251_v57, %v1405_v42 }
  0x49   :  { %1257 = vmatpush3.bf16.msk.msra.mxu1 %vm1256_vm11, %v1294_v22  ;;  %vm463_vm15 = vmand %vm333_vm7, %vm399_vm4  ;;  %vm318_vm4 = vcmp.ge.s32.totalorder %v251_v57, %v1403_v41  ;;  %vm349_vm11 = vcmp.ge.s32.totalorder %v282_v58, %v1403_v41 }
  0x4a   :  { %vm464_vm12 = vmand %vm334_vm6, %vm400_vm10 }
  0x4b   :  { %vm1226_vm5 = vmpackc.low %vm464_vm12, %vm463_vm15  ;;  %vm415_vm15 = vcmp.lt.s32.totalorder %v282_v58, %v1405_v42  ;;  %vm416_vm12 = vcmp.lt.s32.totalorder %v283_v59, %v1405_v42  ;;  %v717_v58 = vld [vmem:[%s1874_s2 + $0x8] sm:$0xff] }
  0x4c   :  { %1227 = vmatprep.subr.msk.bf16.mxu0 %vm1226_vm5, %v1294_v22  ;;  %vm495_vm14 = vmand %vm365_vm2, %vm431_vm9  ;;  %vm350_vm9 = vcmp.ge.s32.totalorder %v283_v59, %v1403_v41  ;;  %vm335_vm5 = vcmp.ge.s32.totalorder %v268_v60, %v1403_v41  ;;  %v718_v59 = vld [vmem:[%s1874_s2 + $0x10] sm:$0xff] }
  0x4d   :  { %vm496_vm7 = vmand %vm366_vm13, %vm432_vm0 }
  0x4e   :  { %vm1258_vm6 = vmpackc.low %vm496_vm7, %vm495_vm14  ;;  %vm401_vm14 = vcmp.lt.s32.totalorder %v268_v60, %v1405_v42  ;;  %vm402_vm7 = vcmp.lt.s32.totalorder %v269_v61, %v1405_v42  ;;  %v719_v60 = vld [vmem:[%s1874_s2 + $0x18] sm:$0xff] }
  0x4f   :  { %1259 = vmatprep.subr.msk.bf16.mxu1 %vm1258_vm6, %v1294_v22  ;;  %vm447_vm10 = vmand %vm317_vm3, %vm383_vm8  ;;  %vm336_vm8 = vcmp.ge.s32.totalorder %v269_v61, %v1403_v41  ;;  %vm367_vm6 = vcmp.ge.s32.totalorder %v300_v62, %v1403_v41  ;;  %v846_v61 = vld [vmem:[%s1875_s3] sm:$0xff] }
  0x50   :  { %vm448_vm2 = vmand %vm318_vm4, %vm384_vm1 }
  0x51   :  { %vm1228_vm13 = vmpackc.low %vm448_vm2, %vm447_vm10  ;;  %vm433_vm10 = vcmp.lt.s32.totalorder %v300_v62, %v1405_v42  ;;  %vm434_vm2 = vcmp.lt.s32.totalorder %v301_v63, %v1405_v42 }
  0x52   :  { %1229 = vmatpush3.bf16.msk.msra.mxu0 %vm1228_vm13, %v1294_v22  ;;  %vm479_vm0 = vmand %vm349_vm11, %vm415_vm15  ;;  %vm368_vm15 = vcmp.ge.s32.totalorder %v301_v63, %v1403_v41 }
  0x53   :  { %vm480_vm3 = vmand %vm350_vm9, %vm416_vm12 }
  0x54   :  { %vm1260_vm4 = vmpackc.low %vm480_vm3, %vm479_vm0  ;;  %vm385_vm3 = vcmp.lt.s32.totalorder %v252_v0, %v1405_v42 }
  0x55   :  { %1261 = vmatpush3.bf16.msk.msra.mxu1 %vm1260_vm4, %v1294_v22  ;;  %vm465_vm1 = vmand %vm335_vm5, %vm401_vm14  ;;  %vm319_vm5 = vcmp.ge.s32.totalorder %v252_v0, %v1403_v41  ;;  %vm320_vm14 = vcmp.ge.s32.totalorder %v253_v1, %v1403_v41  ;;  %vm351_vm4 = vcmp.ge.s32.totalorder %v284_v2, %v1403_v41 }
  0x56   :  { %vm466_vm11 = vmand %vm336_vm8, %vm402_vm7  ;;  %vm386_vm8 = vcmp.lt.s32.totalorder %v253_v1, %v1405_v42 }
  0x57   :  { %vm1230_vm13 = vmpackc.low %vm466_vm11, %vm465_vm1  ;;  %vm417_vm1 = vcmp.lt.s32.totalorder %v284_v2, %v1405_v42  ;;  %vm418_vm11 = vcmp.lt.s32.totalorder %v285_v3, %v1405_v42 }
  0x58   :  { %1231 = vmatprep.subr.msk.bf16.mxu0 %vm1230_vm13, %v1294_v22  ;;  %vm497_vm9 = vmand %vm367_vm6, %vm433_vm10  ;;  %vm352_vm10 = vcmp.ge.s32.totalorder %v285_v3, %v1403_v41  ;;  %vm337_vm13 = vcmp.ge.s32.totalorder %v270_v5, %v1403_v41 }
  0x59   :  { %vm498_vm12 = vmand %vm368_vm15, %vm434_vm2 }
  0x5a   :  { %vm1262_vm0 = vmpackc.low %vm498_vm12, %vm497_vm9  ;;  %vm403_vm9 = vcmp.lt.s32.totalorder %v270_v5, %v1405_v42 }
  0x5b   :  { %1263 = vmatprep.subr.msk.bf16.mxu1 %vm1262_vm0, %v1294_v22  ;;  %vm449_vm7 = vmand %vm319_vm5, %vm385_vm3  ;;  %vm338_vm0 = vcmp.ge.s32.totalorder %v271_v6, %v1403_v41  ;;  %vm404_vm5 = vcmp.lt.s32.totalorder %v271_v6, %v1405_v42 }
  0x5c   :  { %vm450_vm6 = vmand %vm320_vm14, %vm386_vm8  ;;  %vm369_vm8 = vcmp.ge.s32.totalorder %v302_v7, %v1403_v41 }
  0x5d   :  { %vm1232_vm15 = vmpackc.low %vm450_vm6, %vm449_vm7  ;;  %vm435_vm7 = vcmp.lt.s32.totalorder %v302_v7, %v1405_v42  ;;  %vm436_vm6 = vcmp.lt.s32.totalorder %v303_v8, %v1405_v42 }
  0x5e   :  { %1233 = vmatpush3.bf16.msk.msra.mxu0 %vm1232_vm15, %v1294_v22  ;;  %vm481_vm2 = vmand %vm351_vm4, %vm417_vm1  ;;  %vm370_vm1 = vcmp.ge.s32.totalorder %v303_v8, %v1403_v41  ;;  %vm321_vm15 = vcmp.ge.s32.totalorder %v254_v9, %v1403_v41 }
  0x5f   :  { %vm482_vm12 = vmand %vm352_vm10, %vm418_vm11 }
  0x60   :  { %vm1264_vm14 = vmpackc.low %vm482_vm12, %vm481_vm2  ;;  %vm387_vm2 = vcmp.lt.s32.totalorder %v254_v9, %v1405_v42  ;;  %vm388_vm12 = vcmp.lt.s32.totalorder %v255_v10, %v1405_v42 }
  0x61   :  { %1265 = vmatpush3.bf16.msk.msra.mxu1 %vm1264_vm14, %v1294_v22  ;;  %vm467_vm3 = vmand %vm337_vm13, %vm403_vm9  ;;  %vm322_vm9 = vcmp.ge.s32.totalorder %v255_v10, %v1403_v41  ;;  %vm353_vm14 = vcmp.ge.s32.totalorder %v286_v11, %v1403_v41 }
  0x62   :  { %vm468_vm4 = vmand %vm338_vm0, %vm404_vm5 }
  0x63   :  { %vm1234_vm10 = vmpackc.low %vm468_vm4, %vm467_vm3  ;;  %vm419_vm3 = vcmp.lt.s32.totalorder %v286_v11, %v1405_v42  ;;  %vm420_vm4 = vcmp.lt.s32.totalorder %v287_v12, %v1405_v42 }
  0x64   :  { %1235 = vmatprep.subr.msk.bf16.mxu0 %vm1234_vm10, %v1294_v22  ;;  %vm499_vm11 = vmand %vm369_vm8, %vm435_vm7  ;;  %vm354_vm7 = vcmp.ge.s32.totalorder %v287_v12, %v1403_v41 }
  0x65   :  { %vm500_vm13 = vmand %vm370_vm1, %vm436_vm6 }
  0x66   :  { %vm1266_vm0 = vmpackc.low %vm500_vm13, %vm499_vm11 }
  0x67   :  { %1267 = vmatprep.subr.msk.bf16.mxu1 %vm1266_vm0, %v1294_v22  ;;  %vm451_vm5 = vmand %vm321_vm15, %vm387_vm2  ;;  %vm744_vm15 = vcmask 64512   ;;  %vm860_vm2 = vcmask 261120  }
  0x68   :  { %vm452_vm8 = vmand %vm322_vm9, %vm388_vm12 }
  0x69   :  { %vm1236_vm10 = vmpackc.low %vm452_vm8, %vm451_vm5 }
  0x6a   :  { %1237 = vmatpush3.bf16.msk.msra.mxu0 %vm1236_vm10, %v1294_v22  ;;  %vm483_vm1 = vmand %vm353_vm14, %vm419_vm3 }
  0x6b   :  { %vm484_vm6 = vmand %vm354_vm7, %vm420_vm4 }
  0x6c   :  { %vm1268_vm11 = vmpackc.low %vm484_vm6, %vm483_vm1 }
  0x6d   :  { %1269 = vmatpush3.bf16.msk.msra.mxu1 %vm1268_vm11, %v1294_v22 }
  0x8b   :  { %v63_v20 = vpop.permute.xlu0 %62 }
  0x8f   :  { %v68_v19 = vpop.permute.xlu0 %67 }
  0x93   :  { %v737_v9 = vpop.permute.xlu0 %736 }
  0xae   :  { %v727_v62 = vpop.permute.xlu1 %726 }
  0xb2   :  { %v732_v63 = vpop.permute.xlu1 %731 }
  0xb6   :  { %v742_v6 = vpop.permute.xlu1 %741 }
  0xea   :  { %v143_v13 = vpop.f32.mrb[0].mxu0 }
  0xeb   :  { %v1767_v14 = vadd.f32 %v143_v13, %v63_v20  ;;  %v220_v15 = vpop.f32.mrb[0].mxu1  ;;  %v145_v16 = vpop.f32.mrb[1].mxu0 }
  0xec   :  { %v1769_v17 = vadd.f32 %v220_v15, %v63_v20  ;;  %v1771_v18 = vadd.f32 %v145_v16, %v63_v20  ;;  %v222_v41 = vpop.f32.mrb[1].mxu1 }
  0xed   :  { %v1773_v42 = vadd.f32 %v222_v41, %v63_v20  ;;  %v231_v23 = vmax.f32 %v1767_v14, 0.0  ;;  %v847_v41 = vld [vmem:[%s1875_s3 + $0x8] sm:$0xff] }
  0xee   :  { %v232_v21 = vmax.f32 %v1771_v18, 0.0  ;;  %v149_v4 = vpop.f32.mrb[2].mxu0  ;;  %v233_v27 = vmax.f32 %v1769_v17, 0.0 }
  0xef   :  { %v234_v22 = vmax.f32 %v1773_v42, 0.0  ;;  %v1778_v24 = vadd.f32 %v149_v4, %v68_v19  ;;  %v226_v25 = vpop.f32.mrb[2].mxu1  ;;  %v151_v26 = vpop.f32.mrb[3].mxu0 }
  0xf0   :  { %v1781_v28 = vadd.f32 %v226_v25, %v68_v19  ;;  %v1783_v29 = vadd.f32 %v151_v26, %v68_v19  ;;  %v228_v30 = vpop.f32.mrb[3].mxu1  ;;  %629 = vmatprep.mubr.f32.mxu0 %v232_v21  ;;  %v858_v4 = vpop.permute.xlu1 %857 }
  0xf1   :  { %v1787_v31 = vadd.f32 %v228_v30, %v68_v19  ;;  %704 = vmatprep.mubr.f32.mxu1 %v234_v22  ;;  %630 = vmatmul.mubr.f32.vlgmr.msra.gmra.mrb[4].mxu0 %v231_v23  ;;  %v235_v33 = vmax.f32 %v1778_v24, 0.0  ;;  %v1295_v19 = vmov 1   ;;  %v853_v26 = vpop.permute.xlu0 %852 }
  0xf2   :  { %v236_v32 = vmax.f32 %v1783_v29, 0.0  ;;  %705 = vmatmul.mubr.f32.vlgmr.msra.gmra.mrb[4].mxu1 %v233_v27  ;;  %v237_v35 = vmax.f32 %v1781_v28, 0.0  ;;  %1284 = vset.pattern.permute.xlu1 %v1295_v19 }
  0xf3   :  { %v238_v34 = vmax.f32 %v1787_v31, 0.0 }
  0xf4   :  { %634 = vmatprep.mubr.f32.mxu0 %v236_v32 }
  0xf5   :  { %709 = vmatprep.mubr.f32.mxu1 %v238_v34  ;;  %635 = vmatmul.mubr.f32.gmra.mrb[6].mxu0 %v235_v33 }
  0xf6   :  { %710 = vmatmul.mubr.f32.gmra.mrb[6].mxu1 %v237_v35  ;;  %1157 = vmatprep.mubr.msk.f32.mxu0 %vm744_vm15, %v716_v36 }
  0xf7   :  { %1171 = vmatprep.mubr.msk.f32.mxu1 %vm860_vm2, %v846_v61 }
 0x1c4   :  { %v1100_v43 = vpop.f32.mrb[4].mxu0 }
 0x1c5   :  { %v1138_v44 = vpop.f32.mrb[4].mxu1  ;;  %v1101_v45 = vpop.f32.mrb[5].mxu0 }
 0x1c6   :  { %v1102_v46 = vadd.f32 %v1101_v45, %v1100_v43  ;;  %v1139_v47 = vpop.f32.mrb[5].mxu1 }
 0x1c7   :  { %v1140_v48 = vadd.f32 %v1139_v47, %v1138_v44 }
 0x1c8   :  { %v1103_v49 = vpop.f32.mrb[6].mxu0 }
 0x1c9   :  { %v707_v50 = vadd.f32 %v1140_v48, %v1102_v46  ;;  %v1141_v51 = vpop.f32.mrb[6].mxu1  ;;  %v1104_v52 = vpop.f32.mrb[7].mxu0 }
 0x1ca   :  { %v1105_v53 = vadd.f32 %v1104_v52, %v1103_v49  ;;  %v1142_v54 = vpop.f32.mrb[7].mxu1 }
 0x1cb   :  { %v1143_v55 = vadd.f32 %v1142_v54, %v1141_v51 }
 0x1cd   :  { %v712_v56 = vadd.f32 %v1143_v55, %v1105_v53 }
 0x1cf   :  { %v715_v57 = vadd.f32 %v712_v56, %v707_v50 }
 0x1d1   :  { %1155 = vmatprep.subr.mxu0 %v715_v57 }
 0x1d2   :  { %1156 = vmatpush3.msra.mxu0 %v715_v57 }
 0x1d3   :  { %1158 = vmatmul.mubr.msk.f32.vlgmr.msra.gmra.mrb[8].mxu0 %vm744_vm15, %v717_v58 }
 0x1d4   :  { %1160 = vmatprep.mubr.msk.f32.mxu0 %vm744_vm15, %v718_v59 }
 0x1d7   :  { %1161 = vmatmul.mubr.msk.f32.gmra.mrb[10].mxu0 %vm744_vm15, %v719_v60 }
 0x2a6   :  { %v1159_v0 = vpop.f32.mrb[8].mxu0 }
 0x2a7   :  { %v829_v1 = vadd.f32 %v1159_v0, %v732_v63  ;;  %v823_v2 = vpop.f32.mrb[9].mxu0 }
 0x2a8   :  { %v824_v3 = vadd.f32 %v823_v2, %v727_v62 }
 0x2a9   :  { %v843_v5 = vmax.f32 %v829_v1, 0.0 }
 0x2aa   :  { %v842_v7 = vmax.f32 %v824_v3, 0.0  ;;  %v1162_v8 = vpop.f32.mrb[10].mxu0 }
 0x2ab   :  { %v839_v10 = vadd.f32 %v1162_v8, %v742_v6  ;;  %v833_v11 = vpop.f32.mrb[11].mxu0 }
 0x2ac   :  { %v1270_v12 = vpack.c.bf16 %v843_v5, %v842_v7  ;;  %v834_v20 = vadd.f32 %v833_v11, %v737_v9 }
 0x2ad   :  { %v845_v13 = vmax.f32 %v839_v10, 0.0 }
 0x2ae   :  { %v844_v15 = vmax.f32 %v834_v20, 0.0  ;;  %1271 = vmatprep.subr.bf16.mxu1 %v1270_v12 }
 0x2af   :  { %1273 = vmatpush3.bf16.msra.mxu1 %v1270_v12 }
 0x2b0   :  { %v1274_v16 = vpack.c.bf16 %v845_v13, %v844_v15 }
 0x2b2   :  { %1275 = vmatprep.subr.bf16.mxu1 %v1274_v16 }
 0x2b3   :  { %1277 = vmatpush3.bf16.msra.mxu1 %v1274_v16 }
 0x2b6   :  { %1172 = vmatmul.mubr.msk.f32.vlgmr.msra.gmra.mrb[8].mxu1 %vm860_vm2, %v847_v41 }
 0x389   :  { %v1173_v25 = vpop.f32.mrb[8].mxu1 }
 0x38a   :  { %v939_v30 = vadd.f32 %v1173_v25, %v858_v4  ;;  %v933_v36 = vpop.f32.mrb[9].mxu1 }
 0x38b   :  { %v934_v37 = vadd.f32 %v933_v36, %v853_v26 }
 0x38d   :  { %v942_v38 = vmax.f32 %v934_v37, %v939_v30 }
 0x38f   :  { %v943_v39 = vsub.f32 %v934_v37, %v942_v38  ;;  %v946_v40 = vsub.f32 %v939_v30, %v942_v38 }
 0x391   :  { %v944_v43 = vmul.f32 1.442695, %v943_v39  ;;  %v947_v44 = vmul.f32 1.442695, %v946_v40 }
 0x393   :  { %1286 = vpow2.f32 %v944_v43 }
 0x394   :  { %1288 = vpow2.f32 %v947_v44 }
 0x39d   :  { %v1287_v45 = vpop.eup %1286 }
 0x39e   :  { %v1289_v46 = vpop.eup %1288 }
 0x39f   :  { %v949_v47 = vadd.f32 %v1289_v46, %v1287_v45 }
 0x3a1   :  { %1290 = vrcp.f32 %v949_v47 }
 0x3ab   :  { %v1291_v48 = vpop.eup %1290 }
 0x3ac   :  { %v951_v49 = vmul.f32 %v1291_v48, %v949_v47 }
 0x3ae   :  { %v952_v50 = vsub.f32 2.0, %v951_v49 }
 0x3b0   :  { %v953_v51 = vmul.f32 %v1291_v48, %v952_v50 }
 0x3b2   :  { %v954_v52 = vmul.f32 %v1287_v45, %v953_v51  ;;  %v955_v53 = vmul.f32 %v1289_v46, %v953_v51 }
 0x3b4   :  { %962 = vperm.xlu1 %1284, %v954_v52   ;;  %958 = vperm.xlu0 %1282, %v954_v52  }
 0x3b8   :  { %971 = vperm.xlu1 %1284, %v955_v53   ;;  %967 = vperm.xlu0 %1282, %v955_v53  }
 0x3bc   :  { %1285 = vset.pattern.permute.xlu0 %v1295_v19 }
 0x433   :  { %v963_v54 = vpop.permute.xlu1 %962  ;;  %v959_v55 = vpop.permute.xlu0 %958 }
 0x434   :  { %v976_v56 = vmul.f32 %v963_v54, %v233_v27  ;;  %v977_v57 = vmul.f32 %v963_v54, %v234_v22  ;;  %v974_v58 = vmul.f32 %v959_v55, %v231_v23  ;;  %v975_v59 = vmul.f32 %v959_v55, %v232_v21 }
 0x437   :  { %v972_v60 = vpop.permute.xlu1 %971  ;;  %v968_v61 = vpop.permute.xlu0 %967 }
 0x438   :  { %v980_v62 = vmul.f32 %v972_v60, %v237_v35  ;;  %v981_v63 = vmul.f32 %v972_v60, %v238_v34  ;;  %v978_v17 = vmul.f32 %v968_v61, %v235_v33  ;;  %v979_v42 = vmul.f32 %v968_v61, %v236_v32 }
 0x43a   :  { %v984_v22 = vadd.f32 %v980_v62, %v976_v56  ;;  %v985_v14 = vadd.f32 %v981_v63, %v977_v57  ;;  %v982_v23 = vadd.f32 %v978_v17, %v974_v58  ;;  %v983_v27 = vadd.f32 %v979_v42, %v975_v59 }
 0x43c   :  { %988 = vst [vmem:[%s1876_s5 + $0x10] sm:$0xff] %v984_v22  ;;  %989 = vst [vmem:[%s1876_s5 + $0x18] sm:$0xff] %v985_v14 }
 0x43d   :  { %986 = vst [vmem:[%s1876_s5] sm:$0xff] %v982_v23  ;;  %987 = vst [vmem:[%s1876_s5 + $0x8] sm:$0xff] %v983_v27 }

</bundles_post_ra>
